<compile_context>
chip_gen: v7x
topology: tpu7x:2x2x1
jax: 0.10.0
libtpu: 0.0.40
codegen_flags: <defaults>
</compile_context>

<pallas_src>
import functools

import jax
import jax.numpy as jnp
from jax.experimental import pallas as pl
from jax.experimental.pallas import tpu as pltpu


def _swish(x):
    return x * jax.nn.sigmoid(x)


def temporal_block_kernel(wpos_ref, x_ref, w1_ref, sb1_ref, wdw_ref, sb2_ref,
                          w3_ref, sb3_ref, o_ref, *,
                          k, dilation, padding, width, cpg, do_res):
    f32 = jnp.float32
    x = x_ref[0]                        # (Cin, HW) f32, channels on sublanes
    wpos = wpos_ref[...]                # (1, HW)   int32: flat position p -> p % W

    # ---- pointwise conv1 (MXU, bf16 operands, f32 accumulation) + folded BN + swish ----
    h1 = jnp.dot(w1_ref[...], x.astype(jnp.bfloat16),
                 preferred_element_type=f32)                       # (E, HW)
    scale1 = sb1_ref[:, 0:1]
    bias1 = sb1_ref[:, 1:2]
    h1 = _swish(h1 * scale1 + bias1)                               # f32

    # value every zero-padded column would carry after conv1 + BN + swish
    pad_val = _swish(bias1)                                        # (E, 1)

    E, HW = h1.shape
    groups = E // cpg

    # ---- grouped / depthwise (1, k) dilated conv along W (VPU + XLU rolls) ----
    acc = jnp.zeros((E, HW), f32)
    for t in range(k):                                             # k is small & static
        s = t * dilation - padding                                 # tap offset in unpadded coords
        valid = jnp.broadcast_to((wpos + s >= 0) & (wpos + s < width), (E, HW))
        for i in range(cpg):
            if cpg == 1:                                           # true depthwise (do_res case)
                src, psrc = h1, pad_val
            else:                                                  # grouped: replicate group input i
                src = jnp.broadcast_to(
                    h1.reshape(groups, cpg, HW)[:, i:i + 1, :],
                    (groups, cpg, HW)).reshape(E, HW)
                psrc = jnp.broadcast_to(
                    pad_val.reshape(groups, cpg, 1)[:, i:i + 1, :],
                    (groups, cpg, 1)).reshape(E, 1)
            if s == 0:
                shifted = src
            else:
                # shifted[c, p] = src[c, (p + s) mod HW]  (wrap positions are masked off)
                shifted = pltpu.roll(src, shift=(-s) % HW, axis=1)
            tap = jnp.where(valid, shifted, jnp.broadcast_to(psrc, (E, HW)))
            j = t * cpg + i
            acc = acc + wdw_ref[:, j:j + 1] * tap
    h2 = _swish(acc * sb2_ref[:, 0:1] + sb2_ref[:, 1:2])           # (E, HW) f32

    # ---- pointwise conv3 + folded BN + swish ----
    h3 = jnp.dot(w3_ref[...], h2.astype(jnp.bfloat16),
                 preferred_element_type=f32)                       # (Cout, HW)
    h3 = _swish(h3 * sb3_ref[:, 0:1] + sb3_ref[:, 1:2])

    if do_res:
        h3 = _swish(h3 + x)                                        # residual with original input

    o_ref[0] = h3


def temporal_block_forward(x_nchw, params, *, kernel_size, dilation, padding, do_res):
    B, Cin, H, W = x_nchw.shape
    E = params["w1"].shape[0]
    Cout = params["w3"].shape[0]
    cpg = params["wdw"].shape[1] // kernel_size

    W_out = W + 2 * padding - dilation * (kernel_size - 1)
    if W_out != W:
        # TODO(synk): stride > 1 and non-'same' conv widths not implemented.
        raise NotImplementedError(
            "kernel assumes stride == 1 and 2*padding == dilation*(kernel_size-1)")
    if do_res:
        assert Cin == Cout, "residual path requires n_inputs == n_outputs"

    HW = H * W
    x_flat = x_nchw.reshape(B, Cin, HW)            # free view: no transpose / HBM pass
    wpos = (jnp.arange(HW, dtype=jnp.int32) % W).reshape(1, HW)

    kern = functools.partial(
        temporal_block_kernel,
        k=kernel_size, dilation=dilation, padding=padding,
        width=W, cpg=cpg, do_res=do_res)

    out = pl.pallas_call(
        kern,
        out_shape=jax.ShapeDtypeStruct((B, Cout, HW), jnp.float32),
        grid_spec=pltpu.PrefetchScalarGridSpec(
            num_scalar_prefetch=0,
            grid=(B,),
            in_specs=[
                pl.BlockSpec((1, HW), lambda b: (0, 0)),                  # wpos
                pl.BlockSpec((1, Cin, HW), lambda b: (b, 0, 0)),          # x
                pl.BlockSpec((E, Cin), lambda b: (0, 0)),                 # w1 (bf16)
                pl.BlockSpec((E, 2), lambda b: (0, 0)),                   # sb1
                pl.BlockSpec((E, kernel_size * cpg), lambda b: (0, 0)),   # wdw
                pl.BlockSpec((E, 2), lambda b: (0, 0)),                   # sb2
                pl.BlockSpec((Cout, E), lambda b: (0, 0)),                # w3 (bf16)
                pl.BlockSpec((Cout, 2), lambda b: (0, 0)),                # sb3
            ],
            out_specs=pl.BlockSpec((1, Cout, HW), lambda b: (b, 0, 0)),
        ),
        compiler_params=pltpu.CompilerParams(
            dimension_semantics=("parallel",),
            vmem_limit_bytes=32 * 1024 * 1024),
    )(wpos, x_flat, params["w1"], params["sb1"], params["wdw"], params["sb2"],
      params["w3"], params["sb3"])

    return out.reshape(B, Cout, H, W)              # free view back to NCHW


# ---------------------------------------------------------------------------
# deterministic parameter construction (mirrors nn.Module __init__ shapes)
# ---------------------------------------------------------------------------
def _fold_bn(conv_bias, gamma, beta, mean, var, eps=1e-5):
    s = gamma / jnp.sqrt(var + eps)
    b = (conv_bias - mean) * s + beta
    return jnp.stack([s, b], axis=1).astype(jnp.float32)   # (C, 2): [:,0]=scale [:,1]=bias


def make_params(key, n_inputs, n_outputs, kernel_size):
    exp_ch = 2 * n_inputs
    do_res = (n_inputs == n_outputs)
    groups = exp_ch if do_res else n_inputs
    cpg = exp_ch // groups                                  # in-channels per group

    ks = jax.random.split(key, 12)
    w1_pt = jax.random.normal(ks[0], (exp_ch, n_inputs)) * 0.2            # (E, Cin, 1, 1)
    b1 = jax.random.normal(ks[1], (exp_ch,)) * 0.1
    wdw_pt = jax.random.normal(ks[2], (exp_ch, cpg, kernel_size)) * 0.2   # (E, E//g, 1, k)
    b2 = jax.random.normal(ks[3], (exp_ch,)) * 0.1
    w3_pt = jax.random.normal(ks[4], (n_outputs, exp_ch)) * 0.2           # (Cout, E, 1, 1)
    b3 = jax.random.normal(ks[5], (n_outputs,)) * 0.1
    g1 = 1.0 + 0.1 * jax.random.normal(ks[6], (exp_ch,))
    g2 = 1.0 + 0.1 * jax.random.normal(ks[7], (exp_ch,))
    g3 = 1.0 + 0.1 * jax.random.normal(ks[8], (n_outputs,))
    be1 = 0.1 * jax.random.normal(ks[9], (exp_ch,))
    be2 = 0.1 * jax.random.normal(ks[10], (exp_ch,))
    be3 = 0.1 * jax.random.normal(ks[11], (n_outputs,))
    m1 = jnp.zeros((exp_ch,)); v1 = jnp.ones((exp_ch,))
    m2 = jnp.full((exp_ch,), 0.05); v2 = jnp.full((exp_ch,), 1.2)
    m3 = jnp.full((n_outputs,), -0.03); v3 = jnp.full((n_outputs,), 0.9)

    # grouped taps stored lane-sliceable: wdw[e, t*cpg + i] = wdw_pt[e, i, t]
    wdw = jnp.transpose(wdw_pt, (0, 2, 1)).reshape(exp_ch, kernel_size * cpg)

    params = dict(
        w1=jnp.asarray(w1_pt, jnp.bfloat16),     # (E, Cin)   MXU operand
        sb1=_fold_bn(b1, g1, be1, m1, v1),       # (E, 2)
        wdw=jnp.asarray(wdw, jnp.float32),       # (E, k*cpg) VPU operand (f32: v5e has no bf16 VPU)
        sb2=_fold_bn(b2, g2, be2, m2, v2),       # (E, 2)
        w3=jnp.asarray(w3_pt, jnp.bfloat16),     # (Cout, E)  MXU operand
        sb3=_fold_bn(b3, g3, be3, m3, v3),       # (Cout, 2)
    )
    return params, do_res


# pure-JAX reference (same math incl. bf16 matmul operands) for a sanity check
def ref_forward(x, params, *, kernel_size, dilation, padding, do_res):
    B, Cin, H, W = x.shape
    E = params["w1"].shape[0]
    cpg = params["wdw"].shape[1] // kernel_size

    xp = jnp.pad(x, ((0, 0), (0, 0), (0, 0), (padding, padding)))
    h1 = jnp.einsum("ec,bchw->behw", params["w1"], xp.astype(jnp.bfloat16),
                    preferred_element_type=jnp.float32)
    s1, b1 = params["sb1"][:, 0], params["sb1"][:, 1]
    h1 = _swish(h1 * s1[None, :, None, None] + b1[None, :, None, None])

    Wp = W + 2 * padding
    Wout = Wp - dilation * (kernel_size - 1)
    acc = jnp.zeros((B, E, H, Wout), jnp.float32)
    for t in range(kernel_size):
        seg = h1[:, :, :, t * dilation: t * dilation + Wout]
        for i in range(cpg):
            src_idx = (jnp.arange(E) // cpg) * cpg + i
            src = seg[:, src_idx, :, :]
            w_ti = params["wdw"][:, t * cpg + i]
            acc = acc + w_ti[None, :, None, None] * src
    s2, b2 = params["sb2"][:, 0], params["sb2"][:, 1]
    h2 = _swish(acc * s2[None, :, None, None] + b2[None, :, None, None])

    h3 = jnp.einsum("oe,behw->bohw", params["w3"], h2.astype(jnp.bfloat16),
                    preferred_element_type=jnp.float32)
    s3, b3 = params["sb3"][:, 0], params["sb3"][:, 1]
    h3 = _swish(h3 * s3[None, :, None, None] + b3[None, :, None, None])
    if do_res:
        h3 = _swish(h3 + x)
    return h3


if __name__ == "__main__":
    # TemporalBlock(n_inputs=4, n_outputs=4, kernel_size=3, stride=1,
    #               dilation=1, padding=1, dropout=0.1, conv2d=True)  -> do_res=True
    B, C, H, W = 2, 4, 16, 16
    kernel_size, dilation, padding = 3, 1, 1

    key = jax.random.PRNGKey(0)
    kx, kp = jax.random.split(key)
    x = jax.random.normal(kx, (B, C, H, W), dtype=jnp.float32)   # NCHW like PyTorch
    params, do_res = make_params(kp, C, C, kernel_size)

    fwd = jax.jit(functools.partial(
        temporal_block_forward, kernel_size=kernel_size, dilation=dilation,
        padding=padding, do_res=do_res))
    out = jax.block_until_ready(fwd(x, params))

    ref = ref_forward(x, params, kernel_size=kernel_size, dilation=dilation,
                      padding=padding, do_res=do_res)
    assert out.shape == (B, C, H, W)
    # Both kernel and reference use bf16 MXU operands with f32 accumulation;
    # tolerance allows a 1-ulp bf16 rounding divergence on the h2 operand.
    max_err = float(jnp.max(jnp.abs(out - ref)))
    assert jnp.allclose(out, ref, atol=5e-3, rtol=5e-3), max_err

    print("KERNEL_OK")
</pallas_src>

<mosaic_0001>
module attributes {stable_mosaic.version = 11 : i64} {
  func.func @temporal_block_kernel(%arg0: i32, %arg1: memref<1x256xi32, #tpu.memory_space<vmem>>, %arg2: memref<1x4x256xf32, #tpu.memory_space<vmem>>, %arg3: memref<8x4xbf16, #tpu.memory_space<vmem>>, %arg4: memref<8x2xf32, #tpu.memory_space<vmem>>, %arg5: memref<8x3xf32, #tpu.memory_space<vmem>>, %arg6: memref<8x2xf32, #tpu.memory_space<vmem>>, %arg7: memref<4x8xbf16, #tpu.memory_space<vmem>>, %arg8: memref<4x2xf32, #tpu.memory_space<vmem>>, %arg9: memref<1x4x256xf32, #tpu.memory_space<vmem>>) attributes {dimension_semantics = [#tpu.dimension_semantics<parallel>], iteration_bounds = array<i64: 2>, scalar_prefetch = 0 : i64, scratch_operands = 0 : i64, tpu.core_type = #tpu.core_type<tc>, window_params = [{pipeline_mode = #tpu.pipeline_mode<synchronous>, transform_indices = @transform_0, window_bounds = array<i64: 1, 256>}, {transform_indices = @transform_1, window_bounds = array<i64: 1, 4, 256>}, {pipeline_mode = #tpu.pipeline_mode<synchronous>, transform_indices = @transform_2, window_bounds = array<i64: 8, 4>}, {pipeline_mode = #tpu.pipeline_mode<synchronous>, transform_indices = @transform_3, window_bounds = array<i64: 8, 2>}, {pipeline_mode = #tpu.pipeline_mode<synchronous>, transform_indices = @transform_4, window_bounds = array<i64: 8, 3>}, {pipeline_mode = #tpu.pipeline_mode<synchronous>, transform_indices = @transform_5, window_bounds = array<i64: 8, 2>}, {pipeline_mode = #tpu.pipeline_mode<synchronous>, transform_indices = @transform_6, window_bounds = array<i64: 4, 8>}, {pipeline_mode = #tpu.pipeline_mode<synchronous>, transform_indices = @transform_7, window_bounds = array<i64: 4, 2>}, {transform_indices = @transform_8, window_bounds = array<i64: 1, 4, 256>}]} {
    %c0 = arith.constant 0 : index
    %c0_0 = arith.constant 0 : index
    %c0_1 = arith.constant 0 : index
    %0 = vector.load %arg2[%c0, %c0_0, %c0_1] : memref<1x4x256xf32, #tpu.memory_space<vmem>>, vector<1x4x256xf32>
    %1 = vector.shape_cast %0 : vector<1x4x256xf32> to vector<4x256xf32>
    %c0_2 = arith.constant 0 : index
    %c0_3 = arith.constant 0 : index
    %2 = vector.load %arg1[%c0_2, %c0_3] : memref<1x256xi32, #tpu.memory_space<vmem>>, vector<1x256xi32>
    %c0_4 = arith.constant 0 : index
    %c0_5 = arith.constant 0 : index
    %3 = vector.load %arg3[%c0_4, %c0_5] : memref<8x4xbf16, #tpu.memory_space<vmem>>, vector<8x4xbf16>
    %4 = arith.truncf %1 : vector<4x256xf32> to vector<4x256xbf16>
    %cst = arith.constant dense<0.000000e+00> : vector<8x256xf32>
    %5 = tpu.matmul %3, %4, %cst {dimension_numbers = #tpu.dot_dimension_numbers<[1], [0], [0], [1], [0, 0, 1, 1], [], []>} : vector<8x4xbf16>, vector<4x256xbf16>, vector<8x256xf32> -> vector<8x256xf32>
    %c0_6 = arith.constant 0 : index
    %c0_7 = arith.constant 0 : index
    %6 = vector.load %arg4[%c0_6, %c0_7] : memref<8x2xf32, #tpu.memory_space<vmem>>, vector<8x1xf32>
    %c0_8 = arith.constant 0 : index
    %c1 = arith.constant 1 : index
    %7 = vector.load %arg4[%c0_8, %c1] : memref<8x2xf32, #tpu.memory_space<vmem>>, vector<8x1xf32>
    %8 = vector.broadcast %6 : vector<8x1xf32> to vector<8x256xf32>
    %9 = arith.mulf %5, %8 : vector<8x256xf32>
    %10 = vector.broadcast %7 : vector<8x1xf32> to vector<8x256xf32>
    %11 = arith.addf %9, %10 : vector<8x256xf32>
    %12 = arith.negf %11 : vector<8x256xf32>
    %13 = math.exp %12 : vector<8x256xf32>
    %cst_9 = arith.constant 1.000000e+00 : f32
    %14 = vector.broadcast %cst_9 : f32 to vector<8x256xf32>
    %15 = arith.addf %14, %13 : vector<8x256xf32>
    %16 = arith.divf %14, %15 : vector<8x256xf32>
    %17 = arith.mulf %11, %16 : vector<8x256xf32>
    %18 = arith.negf %7 : vector<8x1xf32>
    %19 = math.exp %18 : vector<8x1xf32>
    %cst_10 = arith.constant 1.000000e+00 : f32
    %20 = vector.broadcast %cst_10 : f32 to vector<8x1xf32>
    %21 = arith.addf %20, %19 : vector<8x1xf32>
    %22 = arith.divf %20, %21 : vector<8x1xf32>
    %23 = arith.mulf %7, %22 : vector<8x1xf32>
    %cst_11 = arith.constant 0.000000e+00 : f32
    %24 = vector.broadcast %cst_11 : f32 to vector<8x256xf32>
    %c-1_i32 = arith.constant -1 : i32
    %25 = vector.broadcast %c-1_i32 : i32 to vector<1x256xi32>
    %26 = arith.addi %2, %25 : vector<1x256xi32>
    %c0_i32 = arith.constant 0 : i32
    %27 = vector.broadcast %c0_i32 : i32 to vector<1x256xi32>
    %28 = arith.cmpi sge, %26, %27 : vector<1x256xi32>
    %c-1_i32_12 = arith.constant -1 : i32
    %29 = vector.broadcast %c-1_i32_12 : i32 to vector<1x256xi32>
    %30 = arith.addi %2, %29 : vector<1x256xi32>
    %c16_i32 = arith.constant 16 : i32
    %31 = vector.broadcast %c16_i32 : i32 to vector<1x256xi32>
    %32 = arith.cmpi slt, %30, %31 : vector<1x256xi32>
    %33 = arith.andi %28, %32 : vector<1x256xi1>
    %34 = vector.shape_cast %33 : vector<1x256xi1> to vector<1x256xi1>
    %35 = vector.broadcast %34 : vector<1x256xi1> to vector<8x256xi1>
    %c1_i32 = arith.constant 1 : i32
    %36 = tpu.dynamic_rotate %17 by %c1_i32 dim 1 : vector<8x256xf32>, i32 -> vector<8x256xf32>
    %37 = vector.shape_cast %23 : vector<8x1xf32> to vector<8x1xf32>
    %38 = vector.broadcast %37 : vector<8x1xf32> to vector<8x256xf32>
    %39 = arith.select %35, %36, %38 : vector<8x256xi1>, vector<8x256xf32>
    %c0_13 = arith.constant 0 : index
    %c0_14 = arith.constant 0 : index
    %40 = vector.load %arg5[%c0_13, %c0_14] : memref<8x3xf32, #tpu.memory_space<vmem>>, vector<8x1xf32>
    %41 = vector.broadcast %40 : vector<8x1xf32> to vector<8x256xf32>
    %42 = arith.mulf %41, %39 : vector<8x256xf32>
    %43 = arith.addf %24, %42 : vector<8x256xf32>
    %c0_i32_15 = arith.constant 0 : i32
    %44 = vector.broadcast %c0_i32_15 : i32 to vector<1x256xi32>
    %45 = arith.addi %2, %44 : vector<1x256xi32>
    %c0_i32_16 = arith.constant 0 : i32
    %46 = vector.broadcast %c0_i32_16 : i32 to vector<1x256xi32>
    %47 = arith.cmpi sge, %45, %46 : vector<1x256xi32>
    %c0_i32_17 = arith.constant 0 : i32
    %48 = vector.broadcast %c0_i32_17 : i32 to vector<1x256xi32>
    %49 = arith.addi %2, %48 : vector<1x256xi32>
    %c16_i32_18 = arith.constant 16 : i32
    %50 = vector.broadcast %c16_i32_18 : i32 to vector<1x256xi32>
    %51 = arith.cmpi slt, %49, %50 : vector<1x256xi32>
    %52 = arith.andi %47, %51 : vector<1x256xi1>
    %53 = vector.shape_cast %52 : vector<1x256xi1> to vector<1x256xi1>
    %54 = vector.broadcast %53 : vector<1x256xi1> to vector<8x256xi1>
    %55 = vector.shape_cast %23 : vector<8x1xf32> to vector<8x1xf32>
    %56 = vector.broadcast %55 : vector<8x1xf32> to vector<8x256xf32>
    %57 = arith.select %54, %17, %56 : vector<8x256xi1>, vector<8x256xf32>
    %c0_19 = arith.constant 0 : index
    %c1_20 = arith.constant 1 : index
    %58 = vector.load %arg5[%c0_19, %c1_20] : memref<8x3xf32, #tpu.memory_space<vmem>>, vector<8x1xf32>
    %59 = vector.broadcast %58 : vector<8x1xf32> to vector<8x256xf32>
    %60 = arith.mulf %59, %57 : vector<8x256xf32>
    %61 = arith.addf %43, %60 : vector<8x256xf32>
    %c1_i32_21 = arith.constant 1 : i32
    %62 = vector.broadcast %c1_i32_21 : i32 to vector<1x256xi32>
    %63 = arith.addi %2, %62 : vector<1x256xi32>
    %c0_i32_22 = arith.constant 0 : i32
    %64 = vector.broadcast %c0_i32_22 : i32 to vector<1x256xi32>
    %65 = arith.cmpi sge, %63, %64 : vector<1x256xi32>
    %c1_i32_23 = arith.constant 1 : i32
    %66 = vector.broadcast %c1_i32_23 : i32 to vector<1x256xi32>
    %67 = arith.addi %2, %66 : vector<1x256xi32>
    %c16_i32_24 = arith.constant 16 : i32
    %68 = vector.broadcast %c16_i32_24 : i32 to vector<1x256xi32>
    %69 = arith.cmpi slt, %67, %68 : vector<1x256xi32>
    %70 = arith.andi %65, %69 : vector<1x256xi1>
    %71 = vector.shape_cast %70 : vector<1x256xi1> to vector<1x256xi1>
    %72 = vector.broadcast %71 : vector<1x256xi1> to vector<8x256xi1>
    %c255_i32 = arith.constant 255 : i32
    %73 = tpu.dynamic_rotate %17 by %c255_i32 dim 1 : vector<8x256xf32>, i32 -> vector<8x256xf32>
    %74 = vector.shape_cast %23 : vector<8x1xf32> to vector<8x1xf32>
    %75 = vector.broadcast %74 : vector<8x1xf32> to vector<8x256xf32>
    %76 = arith.select %72, %73, %75 : vector<8x256xi1>, vector<8x256xf32>
    %c0_25 = arith.constant 0 : index
    %c2 = arith.constant 2 : index
    %77 = vector.load %arg5[%c0_25, %c2] : memref<8x3xf32, #tpu.memory_space<vmem>>, vector<8x1xf32>
    %78 = vector.broadcast %77 : vector<8x1xf32> to vector<8x256xf32>
    %79 = arith.mulf %78, %76 : vector<8x256xf32>
    %80 = arith.addf %61, %79 : vector<8x256xf32>
    %c0_26 = arith.constant 0 : index
    %c0_27 = arith.constant 0 : index
    %81 = vector.load %arg6[%c0_26, %c0_27] : memref<8x2xf32, #tpu.memory_space<vmem>>, vector<8x1xf32>
    %82 = vector.broadcast %81 : vector<8x1xf32> to vector<8x256xf32>
    %83 = arith.mulf %80, %82 : vector<8x256xf32>
    %c0_28 = arith.constant 0 : index
    %c1_29 = arith.constant 1 : index
    %84 = vector.load %arg6[%c0_28, %c1_29] : memref<8x2xf32, #tpu.memory_space<vmem>>, vector<8x1xf32>
    %85 = vector.broadcast %84 : vector<8x1xf32> to vector<8x256xf32>
    %86 = arith.addf %83, %85 : vector<8x256xf32>
    %87 = arith.negf %86 : vector<8x256xf32>
    %88 = math.exp %87 : vector<8x256xf32>
    %cst_30 = arith.constant 1.000000e+00 : f32
    %89 = vector.broadcast %cst_30 : f32 to vector<8x256xf32>
    %90 = arith.addf %89, %88 : vector<8x256xf32>
    %91 = arith.divf %89, %90 : vector<8x256xf32>
    %92 = arith.mulf %86, %91 : vector<8x256xf32>
    %c0_31 = arith.constant 0 : index
    %c0_32 = arith.constant 0 : index
    %93 = vector.load %arg7[%c0_31, %c0_32] : memref<4x8xbf16, #tpu.memory_space<vmem>>, vector<4x8xbf16>
    %94 = arith.truncf %92 : vector<8x256xf32> to vector<8x256xbf16>
    %cst_33 = arith.constant dense<0.000000e+00> : vector<4x256xf32>
    %95 = tpu.matmul %93, %94, %cst_33 {dimension_numbers = #tpu.dot_dimension_numbers<[1], [0], [0], [1], [0, 0, 1, 1], [], []>} : vector<4x8xbf16>, vector<8x256xbf16>, vector<4x256xf32> -> vector<4x256xf32>
    %c0_34 = arith.constant 0 : index
    %c0_35 = arith.constant 0 : index
    %96 = vector.load %arg8[%c0_34, %c0_35] : memref<4x2xf32, #tpu.memory_space<vmem>>, vector<4x1xf32>
    %97 = vector.broadcast %96 : vector<4x1xf32> to vector<4x256xf32>
    %98 = arith.mulf %95, %97 : vector<4x256xf32>
    %c0_36 = arith.constant 0 : index
    %c1_37 = arith.constant 1 : index
    %99 = vector.load %arg8[%c0_36, %c1_37] : memref<4x2xf32, #tpu.memory_space<vmem>>, vector<4x1xf32>
    %100 = vector.broadcast %99 : vector<4x1xf32> to vector<4x256xf32>
    %101 = arith.addf %98, %100 : vector<4x256xf32>
    %102 = arith.negf %101 : vector<4x256xf32>
    %103 = math.exp %102 : vector<4x256xf32>
    %cst_38 = arith.constant 1.000000e+00 : f32
    %104 = vector.broadcast %cst_38 : f32 to vector<4x256xf32>
    %105 = arith.addf %104, %103 : vector<4x256xf32>
    %106 = arith.divf %104, %105 : vector<4x256xf32>
    %107 = arith.mulf %101, %106 : vector<4x256xf32>
    %108 = arith.addf %107, %1 : vector<4x256xf32>
    %109 = arith.negf %108 : vector<4x256xf32>
    %110 = math.exp %109 : vector<4x256xf32>
    %cst_39 = arith.constant 1.000000e+00 : f32
    %111 = vector.broadcast %cst_39 : f32 to vector<4x256xf32>
    %112 = arith.addf %111, %110 : vector<4x256xf32>
    %113 = arith.divf %111, %112 : vector<4x256xf32>
    %114 = arith.mulf %108, %113 : vector<4x256xf32>
    %c0_40 = arith.constant 0 : index
    %c0_41 = arith.constant 0 : index
    %c0_42 = arith.constant 0 : index
    %115 = vector.load %arg9[%c0_40, %c0_41, %c0_42] : memref<1x4x256xf32, #tpu.memory_space<vmem>>, vector<1x4x256xf32>
    %116 = vector.shape_cast %115 : vector<1x4x256xf32> to vector<4x256xf32>
    %117 = vector.shape_cast %114 : vector<4x256xf32> to vector<1x4x256xf32>
    tpu.vector_store %arg9[%c0_40, %c0_41, %c0_42], %117 {strides = array<i32>} : memref<1x4x256xf32, #tpu.memory_space<vmem>>, vector<1x4x256xf32>,
    return
  }
  func.func @transform_0(%arg0: i32) -> (i32, i32) {
    %c0_i32 = arith.constant 0 : i32
    %c0_i32_0 = arith.constant 0 : i32
    %c0_i32_1 = arith.constant 0 : i32
    return %c0_i32, %c0_i32_0 : i32, i32
  }
  func.func @transform_1(%arg0: i32) -> (i32, i32, i32) {
    %c0_i32 = arith.constant 0 : i32
    %c0_i32_0 = arith.constant 0 : i32
    %c0_i32_1 = arith.constant 0 : i32
    return %arg0, %c0_i32, %c0_i32_0 : i32, i32, i32
  }
  func.func @transform_2(%arg0: i32) -> (i32, i32) {
    %c0_i32 = arith.constant 0 : i32
    %c0_i32_0 = arith.constant 0 : i32
    %c0_i32_1 = arith.constant 0 : i32
    return %c0_i32, %c0_i32_0 : i32, i32
  }
  func.func @transform_3(%arg0: i32) -> (i32, i32) {
    %c0_i32 = arith.constant 0 : i32
    %c0_i32_0 = arith.constant 0 : i32
    %c0_i32_1 = arith.constant 0 : i32
    return %c0_i32, %c0_i32_0 : i32, i32
  }
  func.func @transform_4(%arg0: i32) -> (i32, i32) {
    %c0_i32 = arith.constant 0 : i32
    %c0_i32_0 = arith.constant 0 : i32
    %c0_i32_1 = arith.constant 0 : i32
    return %c0_i32, %c0_i32_0 : i32, i32
  }
  func.func @transform_5(%arg0: i32) -> (i32, i32) {
    %c0_i32 = arith.constant 0 : i32
    %c0_i32_0 = arith.constant 0 : i32
    %c0_i32_1 = arith.constant 0 : i32
    return %c0_i32, %c0_i32_0 : i32, i32
  }
  func.func @transform_6(%arg0: i32) -> (i32, i32) {
    %c0_i32 = arith.constant 0 : i32
    %c0_i32_0 = arith.constant 0 : i32
    %c0_i32_1 = arith.constant 0 : i32
    return %c0_i32, %c0_i32_0 : i32, i32
  }
  func.func @transform_7(%arg0: i32) -> (i32, i32) {
    %c0_i32 = arith.constant 0 : i32
    %c0_i32_0 = arith.constant 0 : i32
    %c0_i32_1 = arith.constant 0 : i32
    return %c0_i32, %c0_i32_0 : i32, i32
  }
  func.func @transform_8(%arg0: i32) -> (i32, i32, i32) {
    %c0_i32 = arith.constant 0 : i32
    %c0_i32_0 = arith.constant 0 : i32
    %c0_i32_1 = arith.constant 0 : i32
    return %arg0, %c0_i32, %c0_i32_0 : i32, i32, i32
  }
}

</mosaic_0001>

<bundles_post_ra>
// kernel: temporal_block_forward.1
= control target key start
LH: loop header
LB: loop body
LE: loop exit
PB: predicated region body
PF: predicated region fallthrough
CT: control target
= control target key end

     0   :  { %s829_s27 = smov 0   ;;  %s912_s0 = inlined_call_operand.vmem [shape: s32[1,256], index: 0, kind: input, shape index: {}]   ;;  %s913_s1 = inlined_call_operand.vmem [shape: f32[2,4,256], index: 1, kind: input, shape index: {}]   ;;  %s914_s2 = inlined_call_operand.vmem [shape: bf16[8,4], index: 2, kind: input, shape index: {}]   ;;  %s915_s3 = inlined_call_operand.vmem [shape: f32[8,2], index: 3, kind: input, shape index: {}]   ;;  %s916_s4 = inlined_call_operand.vmem [shape: f32[8,3], index: 4, kind: input, shape index: {}]   ;;  %s917_s5 = inlined_call_operand.vmem [shape: f32[8,2], index: 5, kind: input, shape index: {}]   ;;  %s918_s6 = inlined_call_operand.vmem [shape: bf16[4,8], index: 6, kind: input, shape index: {}]   ;;  %s919_s7 = inlined_call_operand.vmem [shape: f32[4,2], index: 7, kind: input, shape index: {}]   ;;  %s920_s8 = inlined_call_operand.vmem [shape: f32[2,4,256], index: 8, kind: output, shape index: {}]  }
   0x1 LB: > { %s686_s28 = sadd.s32 4294967295, %s777_s27   ;;  %p690_p0 = scmp.ge.s32.totalorder %s777_s27, 1  ;;  %s777_s27 = sphi %s829_s27, %s18_s27  }
   0x2   : > { %p262_p1 = scmp.lt.s32.totalorder %s777_s27, 3 }
   0x4   : > { %p263_p2 = pnand %p690_p0, %p262_p1 }
   0x5   : > { %p296_p3 = scmp.lt.s32.totalorder (!%p263_p2), %s686_s28, 1  ;;  %v779_v0 = vmov (!%p263_p2), 0   ;;  %v367_v1 = vld [vmem:[%s915_s3] sm:$0xff] (!%p263_p2)  ;;  %vm319_vm0 = vcmask (!%p263_p2), 1041408   ;;  %v780_v5 = vmov (!%p263_p2), 1   ;;  %vm315_vm1 = vcmask (!%p263_p2), 31744  }
   0x6   : > { %266 = sbr.rel (%p263_p2) target bundleno = 719 (0x2cf), region = 52  ;;  %358 = vmatprep.mubr.bf16.mxu0 (!%p263_p2), %v779_v0  ;;  %725 = vset.pattern.permute.xlu0 (!%p263_p2), %v779_v0  ;;  %v433_v2 = vld [vmem:[%s916_s4] sm:$0xff] (!%p263_p2)  ;;  %v699_v3 = vmul.f32 (!%p263_p2), -1.442695, %v367_v1  ;;  %v781_v15 = vmov (!%p263_p2), 2   ;;  %s782_s19 = smov (!%p263_p2), 1   ;;  %v407_v42 = vlaneseq (!%p263_p2) }
   0x7   : > { %370 = vperm.xlu0 (!%p263_p2), %725, %v367_v1   ;;  %727 = vset.pattern.permute.xlu1 (!%p263_p2), %v779_v0  ;;  %v309_v10 = vld [vmem:[%s914_s2] sm:$0xf] (!%p263_p2)  ;;  %s783_s20 = smov (!%p263_p2), 127  }
   0x8   : > { %436 = vperm.xlu1 (!%p263_p2), %727, %v433_v2   ;;  %573 = vmatprep.mubr.bf16.mxu1 (!%p263_p2), %v779_v0  ;;  %735 = vpow2.f32 (!%p263_p2), %v699_v3  ;;  %v499_v16 = vld [vmem:[%s917_s5] sm:$0xff] (!%p263_p2)  ;;  %v408_v43 = vshrl.u32 (!%p263_p2), %v407_v42, 7  ;;  %v422_v51 = vand.u32 (!%p263_p2), 127, %v407_v42 }
   0x9   : > { %v582_v37 = vld [vmem:[%s919_s7] sm:$0xf] (!%p263_p2) }
   0xa   : > { %v308_v39 = vld [vmem:[%s912_s0] sm:$0x3] (!%p263_p2)  ;;  %v409_v46 = vsub.s32 (!%p263_p2), 0, %v408_v43  ;;  %v413_v47 = vsub.s32 (!%p263_p2), 1, %v408_v43  ;;  %vm423_vm11 = vcmp.lt.s32.totalorder (!%p263_p2), %v422_v51, 1 }
   0xb   : > { %726 = vset.pattern.permute.xlu0 (!%p263_p2), %v780_v5  ;;  %v402_v41 = vadd.s32 (!%p263_p2), 4294967295, %v308_v39  ;;  %vm443_vm2 = vcmp.ge.s32.totalorder (!%p263_p2), %v308_v39, 0  ;;  %vm444_vm3 = vcmp.lt.s32.totalorder (!%p263_p2), %v308_v39, 16  ;;  %v467_v44 = vadd.s32 (!%p263_p2), 1, %v308_v39  ;;  %v527_v42 = vld [vmem:[%s918_s6] sm:$0x3] (!%p263_p2) }
   0xc   : > { %376 = vperm.xlu0 (!%p263_p2), %726, %v367_v1   ;;  %728 = vset.pattern.permute.xlu1 (!%p263_p2), %v780_v5  ;;  %vm445_vm6 = vmand (!%p263_p2), %vm443_vm2, %vm444_vm3  ;;  %vm534_vm3 = vcmask (!%p263_p2), 1043456  }
   0xd   : > { %s926_s28 = smov (!%p296_p3, %s686_s28), 1  ;;  %460 = vperm.xlu1 %728, %v433_v2   ;;  %vm403_vm4 = vcmp.ge.s32.totalorder %v402_v41, 0  ;;  %vm404_vm5 = vcmp.lt.s32.totalorder %v402_v41, 16  ;;  %vm468_vm8 = vcmp.ge.s32.totalorder %v467_v44, 0  ;;  %vm469_vm9 = vcmp.lt.s32.totalorder %v467_v44, 16 }
   0xe   : > { %s710_s11 = sshll.u32 %s926_s28, 3  ;;  %vm405_vm7 = vmand %vm403_vm4, %vm404_vm5  ;;  %v446_v48 = vsel %vm445_vm6, 1, %v779_v0  ;;  %vm530_vm4 = vcmask 64512  }
   0xf   : > { %s300_s14 = scalar_lea.vmem %s913_s1, %s710_s11  ;;  %v406_v50 = vsel %vm405_vm7, 1, %v779_v0  ;;  %vm470_vm10 = vmand %vm468_vm8, %vm469_vm9  ;;  %v450_v52 = vrot.slane %v446_v48, %v409_v46  ;;  %v454_v53 = vrot.slane %v446_v48, %v413_v47  ;;  %s305_s9 = scalar_lea.vmem %s920_s8, %s710_s11 }
  0x10   : > { %v855_v4 = vld [vmem:[%s300_s14] sm:$0xff]  ;;  %729 = vset.pattern.permute.xlu0 %v781_v15  ;;  %v410_v54 = vrot.slane %v406_v50, %v409_v46  ;;  %v414_v55 = vrot.slane %v406_v50, %v413_v47  ;;  %v471_v57 = vsel %vm470_vm10, 1, %v779_v0 }
  0x11   : > { %v859_v6 = vcombine.high %v855_v4, %v855_v4  ;;  %v313_v7 = vpack.c.bf16 %v855_v4, %v855_v4  ;;  %492 = vperm.xlu0 %729, %v433_v2   ;;  %vm886_vm12 = vcmp.eq.s32.totalorder %v450_v52, 1  ;;  %vm890_vm13 = vcmp.eq.s32.totalorder %v454_v53, 1 }
  0x12   : > { %v736_v11 = vpop.eup %735  ;;  %vm415_vm14 = vcmp.eq.s32.totalorder %v410_v54, 1  ;;  %vm416_vm15 = vcmp.eq.s32.totalorder %v414_v55, 1  ;;  %v475_v61 = vrot.slane %v471_v57, %v409_v46  ;;  %v479_v62 = vrot.slane %v471_v57, %v413_v47 }
  0x13   : > { %v314_v8 = vpack.c.bf16 %v859_v6, %v859_v6  ;;  %v321_v9 = vsel %vm319_vm0, %v313_v7, 0  ;;  %v398_v12 = vadd.f32 1.0, %v736_v11 }
  0x14   : > { %vm481_vm2 = vcmp.eq.s32.totalorder %v479_v62, 1 }
  0x15   : > { %695 = vmatprep.subr.msk.bf16.mxu0 %vm319_vm0, %v314_v8  ;;  %737 = vrcp.f32 %v398_v12  ;;  %730 = vset.pattern.permute.xlu0 %v779_v0  ;;  %vm486_vm0 = vcmp.lt.s32.totalorder %v422_v51, 127 }
  0x16   : > { %327 = vmatpush1.bf16.msra.mxu0 %v321_v9  ;;  %502 = vperm.xlu0 %730, %v499_v16  }
  0x19   : > { %696 = vmatmul.mubr.msk.bf16.vlgmr.msra.gmra.mrb[0].mxu0 %vm315_vm1, %v309_v10  ;;  %vm480_vm1 = vcmp.eq.s32.totalorder %v475_v61, 1 }
  0x1a   : > { %731 = vset.pattern.permute.xlu0 %v780_v5 }
  0x1b   : > { %508 = vperm.xlu0 %731, %v499_v16  }
  0x1f   : > { %v738_v13 = vpop.eup %737 }
  0x20   : > { %v401_v14 = vmul.f32 %v738_v13, %v367_v1 }
  0x22   : > { %428 = vperm.xlu1 %728, %v401_v14  }
  0x26   : > { %732 = vset.pattern.permute.xlu1 %v779_v0 }
  0x86   : > { %v371_v17 = vpop.permute.xlu0 %370 }
  0x87   : > { %v437_v38 = vpop.permute.xlu1 %436 }
  0x8b   : > { %v377_v19 = vpop.permute.xlu0 %376 }
  0x8c   : > { %v461_v40 = vpop.permute.xlu1 %460 }
  0x90   : > { %v493_v58 = vpop.permute.xlu0 %492 }
  0x95   : > { %v503_v11 = vpop.permute.xlu0 %502 }
  0xa1   : > { %v429_v45 = vpop.permute.xlu1 %428 }
  0xec   : > { %v360_v18 = vpop.f32.mrb[0].mxu0 }
  0xed   : > { %v373_v20 = vmul.f32 %v371_v17, %v360_v18  ;;  %v362_v21 = vpop.f32.mrb[1].mxu0 }
  0xee   : > { %v374_v22 = vmul.f32 %v371_v17, %v362_v21  ;;  %v364_v23 = vpop.f32.mrb[2].mxu0 }
  0xef   : > { %v379_v24 = vadd.f32 %v377_v19, %v373_v20  ;;  %v365_v25 = vpop.f32.mrb[3].mxu0 }
  0xf0   : > { %v380_v26 = vadd.f32 %v377_v19, %v374_v22 }
  0xf1   : > { %v697_v27 = vmul.f32 -1.442695, %v379_v24 }
  0xf2   : > { %v698_v28 = vmul.f32 -1.442695, %v380_v26 }
  0xf3   : > { %739 = vpow2.f32 %v697_v27 }
  0xf4   : > { %741 = vpow2.f32 %v698_v28 }
  0xfd   : > { %v740_v29 = vpop.eup %739 }
  0xfe   : > { %v387_v30 = vadd.f32 1.0, %v740_v29  ;;  %v742_v31 = vpop.eup %741 }
  0xff   : > { %v388_v32 = vadd.f32 1.0, %v742_v31 }
 0x100   : > { %743 = vrcp.f32 %v387_v30 }
 0x101   : > { %745 = vrcp.f32 %v388_v32 }
 0x10a   : > { %v744_v33 = vpop.eup %743 }
 0x10b   : > { %v873_v34 = vmul.f32 %v744_v33, %v379_v24  ;;  %v746_v35 = vpop.eup %745  ;;  %v509_v24 = vpop.permute.xlu0 %508 }
 0x10c   : > { %v394_v36 = vmul.f32 %v746_v35, %v380_v26 }
 0x10d   : > { %417 = vrot.lane.b32.xlu1 %v873_v34, %s782_s19 }
 0x10e   : > { %v458_v7 = vsel %vm890_vm13, %v394_v36, %v429_v45 }
 0x10f   : > { %v464_v15 = vmul.f32 %v461_v40, %v458_v7 }
 0x111   : > { %482 = vrot.lane.b32.xlu1 %v873_v34, %s783_s20 }
 0x115   : > { %419 = vrot.lane.b32.xlu1 %v394_v36, %s782_s19 }
 0x119   : > { %484 = vrot.lane.b32.xlu1 %v394_v36, %s783_s20 }
 0x11d   : > { %585 = vperm.xlu1 %732, %v582_v37  }
 0x121   : > { %733 = vset.pattern.permute.xlu1 %v780_v5  ;;  %v457_v5 = vsel %vm886_vm12, %v873_v34, %v429_v45 }
 0x122   : > { %591 = vperm.xlu1 %733, %v582_v37   ;;  %v463_v14 = vmul.f32 %v461_v40, %v457_v5 }
 0x17f   : > { %v418_v49 = vpop.permute.xlu1 %417 }
 0x183   : > { %v483_v56 = vpop.permute.xlu1 %482 }
 0x187   : > { %v420_v63 = vpop.permute.xlu1 %419 }
 0x188   : > { %v424_v1 = vsel %vm423_vm11, %v418_v49, %v420_v63  ;;  %v425_v2 = vsel %vm423_vm11, %v420_v63, %v418_v49 }
 0x189   : > { %v431_v3 = vsel %vm415_vm14, %v425_v2, %v429_v45  ;;  %v432_v0 = vsel %vm416_vm15, %v424_v1, %v429_v45 }
 0x18a   : > { %v439_v8 = vmul.f32 %v437_v38, %v431_v3  ;;  %v440_v9 = vmul.f32 %v437_v38, %v432_v0 }
 0x18b   : > { %v485_v10 = vpop.permute.xlu1 %484 }
 0x18c   : > { %v487_v12 = vsel %vm486_vm0, %v483_v56, %v485_v10  ;;  %v488_v13 = vsel %vm486_vm0, %v485_v10, %v483_v56  ;;  %v465_v20 = vadd.f32 %v463_v14, %v439_v8  ;;  %v466_v21 = vadd.f32 %v464_v15, %v440_v9 }
 0x18d   : > { %v489_v16 = vsel %vm480_vm1, %v487_v12, %v429_v45  ;;  %v490_v17 = vsel %vm481_vm2, %v488_v13, %v429_v45 }
 0x18e   : > { %v495_v18 = vmul.f32 %v493_v58, %v489_v16  ;;  %v496_v19 = vmul.f32 %v493_v58, %v490_v17 }
 0x190   : > { %v497_v22 = vadd.f32 %v495_v18, %v465_v20  ;;  %v498_v23 = vadd.f32 %v496_v19, %v466_v21 }
 0x192   : > { %v505_v25 = vmul.f32 %v503_v11, %v497_v22  ;;  %v506_v26 = vmul.f32 %v503_v11, %v498_v23 }
 0x194   : > { %v511_v27 = vadd.f32 %v509_v24, %v505_v25  ;;  %v512_v28 = vadd.f32 %v509_v24, %v506_v26 }
 0x196   : > { %v700_v29 = vmul.f32 -1.442695, %v511_v27  ;;  %v701_v30 = vmul.f32 -1.442695, %v512_v28 }
 0x198   : > { %747 = vpow2.f32 %v700_v29 }
 0x199   : > { %749 = vpow2.f32 %v701_v30 }
 0x19c   : > { %v586_v43 = vpop.permute.xlu1 %585 }
 0x1a1   : > { %v592_v45 = vpop.permute.xlu1 %591 }
 0x1a2   : > { %v748_v31 = vpop.eup %747 }
 0x1a3   : > { %v750_v32 = vpop.eup %749  ;;  %v519_v33 = vadd.f32 1.0, %v748_v31 }
 0x1a4   : > { %v520_v34 = vadd.f32 1.0, %v750_v32 }
 0x1a5   : > { %751 = vrcp.f32 %v519_v33 }
 0x1a6   : > { %753 = vrcp.f32 %v520_v34 }
 0x1af   : > { %v752_v35 = vpop.eup %751 }
 0x1b0   : > { %v754_v36 = vpop.eup %753  ;;  %v525_v37 = vmul.f32 %v752_v35, %v511_v27 }
 0x1b1   : > { %v526_v38 = vmul.f32 %v754_v36, %v512_v28 }
 0x1b2   : > { %v528_v39 = vpack.c.bf16 %v525_v37, %v525_v37 }
 0x1b3   : > { %v529_v40 = vpack.c.bf16 %v526_v38, %v526_v38 }
 0x1b4   : > { %v536_v41 = vsel %vm534_vm3, %v528_v39, 0 }
 0x1b5   : > { %702 = vmatprep.subr.msk.bf16.mxu1 %vm534_vm3, %v529_v40 }
 0x1b6   : > { %542 = vmatpush1.bf16.msra.mxu1 %v536_v41 }
 0x1b9   : > { %703 = vmatmul.mubr.msk.bf16.vlgmr.msra.gmra.mrb[0].mxu1 %vm530_vm4, %v527_v42 }
 0x28c   : > { %v575_v44 = vpop.f32.mrb[0].mxu1 }
 0x28d   : > { %v588_v46 = vmul.f32 %v586_v43, %v575_v44  ;;  %v577_v47 = vpop.f32.mrb[1].mxu1 }
 0x28e   : > { %v589_v48 = vmul.f32 %v586_v43, %v577_v47  ;;  %v579_v49 = vpop.f32.mrb[2].mxu1 }
 0x28f   : > { %v594_v50 = vadd.f32 %v592_v45, %v588_v46  ;;  %v580_v51 = vpop.f32.mrb[3].mxu1 }
 0x290   : > { %v595_v52 = vadd.f32 %v592_v45, %v589_v48 }
 0x291   : > { %v704_v53 = vmul.f32 -1.442695, %v594_v50 }
 0x292   : > { %v705_v54 = vmul.f32 -1.442695, %v595_v52 }
 0x293   : > { %755 = vpow2.f32 %v704_v53 }
 0x294   : > { %757 = vpow2.f32 %v705_v54 }
 0x29d   : > { %v756_v55 = vpop.eup %755 }
 0x29e   : > { %v758_v56 = vpop.eup %757  ;;  %v602_v57 = vadd.f32 1.0, %v756_v55 }
 0x29f   : > { %v603_v58 = vadd.f32 1.0, %v758_v56 }
 0x2a0   : > { %759 = vrcp.f32 %v602_v57 }
 0x2a1   : > { %761 = vrcp.f32 %v603_v58 }
 0x2aa   : > { %v760_v59 = vpop.eup %759 }
 0x2ab   : > { %v762_v60 = vpop.eup %761  ;;  %v608_v61 = vmul.f32 %v760_v59, %v594_v50 }
 0x2ac   : > { %v609_v62 = vmul.f32 %v762_v60, %v595_v52 }
 0x2ad   : > { %v610_v63 = vadd.f32 %v608_v61, %v855_v4 }
 0x2ae   : > { %v611_v1 = vadd.f32 %v609_v62, %v859_v6 }
 0x2af   : > { %v706_v2 = vmul.f32 -1.442695, %v610_v63 }
 0x2b0   : > { %v707_v3 = vmul.f32 -1.442695, %v611_v1 }
 0x2b1   : > { %763 = vpow2.f32 %v706_v2 }
 0x2b2   : > { %765 = vpow2.f32 %v707_v3 }
 0x2bb   : > { %v764_v0 = vpop.eup %763 }
 0x2bc   : > { %v766_v5 = vpop.eup %765  ;;  %v618_v7 = vadd.f32 1.0, %v764_v0 }
 0x2bd   : > { %v619_v8 = vadd.f32 1.0, %v766_v5 }
 0x2be   : > { %767 = vrcp.f32 %v618_v7 }
 0x2bf   : > { %769 = vrcp.f32 %v619_v8 }
 0x2c8   : > { %v768_v9 = vpop.eup %767 }
 0x2c9   : > { %v770_v10 = vpop.eup %769  ;;  %v624_v11 = vmul.f32 %v768_v9, %v610_v63 }
 0x2ca   : > { %v625_v12 = vmul.f32 %v770_v10, %v611_v1 }
 0x2cc   : > { %v628_v4 = vcombine.low %v624_v11, %v625_v12 }
 0x2ce   : > { %630 = vst [vmem:[%s305_s9] sm:$0xff] %v628_v4 }
 0x2cf PF: > { %s18_s27 = sadd.s32 1, %s777_s27  }
 0x2d0   : > { %p15_p4 = scmp.ge.s32.totalorder %s18_s27, 4  }
 0x2d2   :  { %17 = sbr.rel (!%p15_p4) target bundleno = 1 (0x1), region = 82 }

</bundles_post_ra>
